<compile_context>
chip_gen: v7x
topology: tpu7x:2x2x1
jax: 0.10.0
libtpu: 0.0.40
codegen_flags: <defaults>
</compile_context>

<pallas_src>
import math

import jax
import jax.numpy as jnp
from jax.experimental import pallas as pl
from jax.experimental.pallas import tpu as pltpu

_LANE = 128        # TPU lane width: last block dim is a full 128-lane multiple.
_TILE_ROWS = 4096  # 4096 x 128 x f32 = 2 MiB per buffer (review-recommended size).


def _round_up(x: int, m: int) -> int:
    return ((x + m - 1) // m) * m


def _choose_tile_rows(rows: int) -> int:
    """Pick a sublane-row tile that is (a) a multiple of 8 when it does not
    cover the whole array, (b) <= _TILE_ROWS, and (c) yields >= 2 grid steps
    when the array is big enough (so both v7x TensorCores get work)."""
    if rows > _TILE_ROWS:
        return _TILE_ROWS
    if rows >= 16:
        half = _round_up((rows + 1) // 2, 8)
        if half < rows:
            return half
    # Single full-extent block: block_shape == array dims is exempt from the
    # (8, 128) divisibility rule.
    return rows


def _copy_kernel(x_ref, o_ref):
    # Pure assignment — no per-element math or casts in the copy path (v5e has
    # a single vector-store slot per bundle; keep it unencumbered).
    o_ref[...] = x_ref[...]


def generator_from_poem_forward(poems: jax.Array, *, use_pallas_kernel: bool = False) -> jax.Array:
    """Pallas equivalent of GeneratorFromPoem.forward (stub -> pass-through).

    Default (use_pallas_kernel=False): return `poems` directly — the reference
    forward is a no-op, so launching any kernel is pure overhead.
    Opt-in (use_pallas_kernel=True): lane-dense, tiled identity copy through a
    Pallas kernel, for API parity / pipeline exercise only.
    """
    if not use_pallas_kernel:
        return poems

    orig_shape = poems.shape
    n = math.prod(orig_shape)

    # Padding in the wrapper would cost extra full HBM passes (per perf
    # review); if the element count is not a lane multiple, just pass through.
    if n == 0 or (n % _LANE) != 0:
        return poems

    rows = n // _LANE
    x2d = poems.reshape(rows, _LANE)          # lane-dense [rows, 128] view (bitcast reshape)

    tile_rows = _choose_tile_rows(rows)
    grid = (pl.cdiv(rows, tile_rows),)        # ragged last block handled by masked stores

    bytes_accessed = 2 * n * jnp.dtype(poems.dtype).itemsize

    out2d = pl.pallas_call(
        _copy_kernel,
        out_shape=jax.ShapeDtypeStruct((rows, _LANE), x2d.dtype),
        grid=grid,
        in_specs=[pl.BlockSpec((tile_rows, _LANE), lambda i: (i, 0))],
        out_specs=pl.BlockSpec((tile_rows, _LANE), lambda i: (i, 0)),
        # Pure memory traffic: tell XLA's scheduler so it can overlap neighbors.
        cost_estimate=pl.CostEstimate(
            flops=0, transcendentals=0, bytes_accessed=bytes_accessed
        ),
        compiler_params=pltpu.CompilerParams(
            # Row-tile axis is independent -> shard across v7x's 2 TensorCores.
            dimension_semantics=("parallel",),
        ),
    )(x2d)

    return out2d.reshape(orig_shape)


if __name__ == "__main__":
    key = jax.random.PRNGKey(0)
    # poems: [batch=2, seq=8, hidden=32]
    poems = jax.random.normal(key, (2, 8, 32), dtype=jnp.float32)

    # Default path: pass-through, no kernel launch (matches the no-op reference).
    out_default = jax.block_until_ready(generator_from_poem_forward(poems))
    assert out_default.shape == poems.shape
    assert out_default.dtype == poems.dtype
    assert jnp.allclose(out_default, poems)

    # Opt-in Pallas path on the small input (rows=4 -> single full-extent block).
    out_k = jax.block_until_ready(
        generator_from_poem_forward(poems, use_pallas_kernel=True)
    )
    assert out_k.shape == poems.shape
    assert out_k.dtype == poems.dtype
    assert jnp.allclose(out_k, poems)

    # Slightly larger input to exercise the multi-step grid path:
    # n = 4096 -> rows = 32 -> tile_rows = 16 -> grid = (2,): both v7x TCs get a tile.
    poems2 = jax.random.normal(jax.random.PRNGKey(0), (2, 32, 64), dtype=jnp.float32)
    out_k2 = jax.block_until_ready(
        generator_from_poem_forward(poems2, use_pallas_kernel=True)
    )
    assert out_k2.shape == poems2.shape
    assert jnp.allclose(out_k2, poems2)

    print("KERNEL_OK")
</pallas_src>

<mosaic_0001>
module attributes {stable_mosaic.version = 11 : i64} {
  func.func @_copy_kernel(%arg0: i32, %arg1: memref<4x128xf32, #tpu.memory_space<vmem>>, %arg2: memref<4x128xf32, #tpu.memory_space<vmem>>) attributes {dimension_semantics = [#tpu.dimension_semantics<parallel>], iteration_bounds = array<i64: 1>, scalar_prefetch = 0 : i64, scratch_operands = 0 : i64, tpu.core_type = #tpu.core_type<tc>, window_params = [{transform_indices = @transform_0, window_bounds = array<i64: 4, 128>}, {transform_indices = @transform_1, window_bounds = array<i64: 4, 128>}]} {
    %c0 = arith.constant 0 : index
    %c0_0 = arith.constant 0 : index
    %0 = vector.load %arg1[%c0, %c0_0] : memref<4x128xf32, #tpu.memory_space<vmem>>, vector<4x128xf32>
    %c0_1 = arith.constant 0 : index
    %c0_2 = arith.constant 0 : index
    %1 = vector.load %arg2[%c0_1, %c0_2] : memref<4x128xf32, #tpu.memory_space<vmem>>, vector<4x128xf32>
    tpu.vector_store %arg2[%c0_1, %c0_2], %0 {strides = array<i32>} : memref<4x128xf32, #tpu.memory_space<vmem>>, vector<4x128xf32>,
    return
  }
  func.func @transform_0(%arg0: i32) -> (i32, i32) {
    %c0_i32 = arith.constant 0 : i32
    %c0_i32_0 = arith.constant 0 : i32
    return %arg0, %c0_i32 : i32, i32
  }
  func.func @transform_1(%arg0: i32) -> (i32, i32) {
    %c0_i32 = arith.constant 0 : i32
    %c0_i32_0 = arith.constant 0 : i32
    return %arg0, %c0_i32 : i32, i32
  }
}

</mosaic_0001>

<bundles_post_ra>
// kernel: tpu_custom_call.1
= control target key start
LH: loop header
LB: loop body
LE: loop exit
PB: predicated region body
PF: predicated region fallthrough
CT: control target
= control target key end

     0   :  { %6 = vsyncpa [#allocation3], 0  ;;  %s124_s0 = inlined_call_operand.hbm [shape: f32[4,128], index: 0, kind: input, shape index: {}]   ;;  %s125_s1 = inlined_call_operand.hbm [shape: f32[4,128], index: 1, kind: output, shape index: {}]  }
   0x1   :  { %7 = vsyncpa [#allocation4], 0  ;;  %s88_s6 = smov [#allocation2]   ;;  %s40_s10 = scalar_lea.hbm %s124_s0, 64 }
   0x2   :  { %s14_s7 = sshll.u32 %s88_s6, 4  ;;  %p41_p0 = scmp.ne.s32.totalorder %s124_s0, %s40_s10  ;;  %s15_s7 = int_to_ptr.vmem [resolvable:$true] %s14_s7 }
   0x3   :  { %p44_p1 = scmp.lt.u32.totalorder %s40_s10, %s124_s0 }
   0x5   :  { %p46_p2 = pnand %p44_p1, %p41_p0 }
   0x7   :  { %49 = shalt.err (!%p46_p2)
}
   0x8   :  { %s50_s15 = scalar_lea.vmem %s15_s7, 64  ;;  %p55_p4 = scmp.lt.s32.totalorder %s15_s7, %s15_s7 }
   0x9   :  { %p51_p3 = scmp.ne.s32.totalorder %s15_s7, %s50_s15  ;;  %p56_p5 = scmp.lt.s32.totalorder %s50_s15, %s50_s15 }
   0xb   :  { %p57_p6 = por %p56_p5, %p55_p4 }
   0xd   :  { %p58_p7 = pnand %p57_p6, %p51_p3 }
   0xf   :  { %61 = shalt.err (!%p58_p7)
}
  0x10   :  { %17 = dma.hbm_to_vmem [thread:$0]  %s124_s0, 64, %s15_s7, [#allocation3]  }
  0x11   :  { %84 = dma.done.wait [#allocation3], 64  }
  0x12   :  { %85 = vsyncadd [#allocation3], 4294967232  ;;  %s89_s18 = smov [#allocation5]   ;;  %v21_v0 = vld [vmem:[#allocation2] sm:$0xf] }
  0x13   :  { %s29_s19 = sshll.u32 %s89_s18, 4  ;;  %22 = vst [vmem:[#allocation5] sm:$0xf] %v21_v0  ;;  %s30_s19 = int_to_ptr.vmem [resolvable:$true] %s29_s19 }
  0x14   :  { %s62_s20 = scalar_lea.vmem %s30_s19, 64  ;;  %p67_p9 = scmp.lt.s32.totalorder %s30_s19, %s30_s19 }
  0x15   :  { %p63_p8 = scmp.ne.s32.totalorder %s30_s19, %s62_s20  ;;  %p68_p10 = scmp.lt.s32.totalorder %s62_s20, %s62_s20 }
  0x17   :  { %p69_p11 = por %p68_p10, %p67_p9 }
  0x19   :  { %p70_p12 = pnand %p69_p11, %p63_p8 }
  0x1b   :  { %73 = shalt.err (!%p70_p12)
}
  0x1c   :  { %s74_s23 = scalar_lea.hbm %s125_s1, 64 }
  0x1d   :  { %p75_p13 = scmp.ne.s32.totalorder %s125_s1, %s74_s23  ;;  %p78_p0 = scmp.lt.u32.totalorder %s74_s23, %s125_s1 }
  0x1f   :  { %p80_p1 = pnand %p78_p0, %p75_p13 }
  0x21   :  { %83 = shalt.err (!%p80_p1)
}
  0x22   :  { %32 = dma.vmem_to_hbm [thread:$0]  %s30_s19, 64, %s125_s1, [#allocation4]  }
  0x23   :  { %86 = dma.done.wait [#allocation4], 64  }
  0x24   :  { %87 = vsyncadd [#allocation4], 4294967232 }
  0x25   :  { %36 = vsyncpa [#allocation3], 1 }
  0x26   :  { %37 = vsyncpa [#allocation4], 1 }

</bundles_post_ra>
